<compile_context>
chip_gen: v6e
topology: v6e:2x2x1
jax: 0.10.0
libtpu: 0.0.40
codegen_flags: <defaults>
</compile_context>

<pallas_src>
import jax
import jax.numpy as jnp
from jax.experimental import pallas as pl
from jax.experimental.pallas import tpu as pltpu


def _round_up(x, m):
    return (x + m - 1) // m * m


def _mlp_kernel(x_ref,
                w1_ref, b1_ref,
                w2_ref, b2_ref,
                w3_ref, b3_ref,
                w4t_ref, b4_ref,
                o_ref):
    x = x_ref[...]  # bf16 [BLOCK_M, input_size]

    # layer1 + ReLU  (bf16 MXU matmul, f32 accumulate)
    h = jnp.dot(x, w1_ref[...], preferred_element_type=jnp.float32) + b1_ref[...]
    h = jnp.maximum(h, 0.0)
    # dropout1 (p=0.2) -> identity in eval mode
    # TODO(synk): train-mode dropout (scaled Bernoulli mask via pltpu.prng_*) not implemented.

    # layer2 + ReLU
    h = jnp.dot(h.astype(jnp.bfloat16), w2_ref[...],
                preferred_element_type=jnp.float32) + b2_ref[...]
    h = jnp.maximum(h, 0.0)
    # dropout2 (p=0.1) -> identity in eval mode

    # layer3 + ReLU
    h = jnp.dot(h.astype(jnp.bfloat16), w3_ref[...],
                preferred_element_type=jnp.float32) + b3_ref[...]
    h = jnp.maximum(h, 0.0)

    # output layer (16 -> 1): VPU broadcast-multiply + lane reduce (skip N=1 MXU matmul).
    out = jnp.sum(h * w4t_ref[...], axis=-1, keepdims=True) + b4_ref[...]
    o_ref[...] = out.astype(o_ref.dtype)


def temperature_nn_forward(x, params, *, max_block_m=1024):
    """x: [batch, input_size] float32. params: dict of (w, b) per layer with
    w shaped [in, out] and b shaped [1, out] (float32)."""
    batch, in_features = x.shape
    w1, b1 = params["layer1"]
    w2, b2 = params["layer2"]
    w3, b3 = params["layer3"]
    w4, b4 = params["output"]

    # Batch tile: large for throughput, but never more than (rounded-up) batch.
    block_m = min(max_block_m, _round_up(batch, 16))
    padded_batch = _round_up(batch, block_m)

    x_p = x if padded_batch == batch else jnp.pad(x, ((0, padded_batch - batch), (0, 0)))
    x_bf = x_p.astype(jnp.bfloat16)

    # bf16 weights for the MXU layers; output-layer weights as an f32 row for the VPU path.
    w1b = w1.astype(jnp.bfloat16)
    w2b = w2.astype(jnp.bfloat16)
    w3b = w3.astype(jnp.bfloat16)
    w4t = w4.T.astype(jnp.float32)          # (1, 16)
    b1f, b2f, b3f, b4f = (b.astype(jnp.float32) for b in (b1, b2, b3, b4))

    def const_spec(a):
        nd = a.ndim
        return pl.BlockSpec(a.shape, lambda i, _nd=nd: (0,) * _nd)

    grid = (padded_batch // block_m,)

    out = pl.pallas_call(
        _mlp_kernel,
        out_shape=jax.ShapeDtypeStruct((padded_batch, 1), jnp.float32),
        grid=grid,
        in_specs=[
            pl.BlockSpec((block_m, in_features), lambda i: (i, 0)),
            const_spec(w1b), const_spec(b1f),
            const_spec(w2b), const_spec(b2f),
            const_spec(w3b), const_spec(b3f),
            const_spec(w4t), const_spec(b4f),
        ],
        out_specs=pl.BlockSpec((block_m, 1), lambda i: (i, 0)),
        compiler_params=pltpu.CompilerParams(dimension_semantics=("parallel",)),
    )(x_bf, w1b, b1f, w2b, b2f, w3b, b3f, w4t, b4f)

    return out[:batch]


def init_params(key, input_size):
    """Deterministic init mimicking nn.Linear shapes (weights transposed to [in, out])."""
    sizes = [(input_size, 64), (64, 32), (32, 16), (16, 1)]
    names = ["layer1", "layer2", "layer3", "output"]
    params = {}
    for name, (fin, fout) in zip(names, sizes):
        key, kw, kb = jax.random.split(key, 3)
        bound = 1.0 / jnp.sqrt(jnp.float32(fin))
        w = jax.random.uniform(kw, (fin, fout), jnp.float32, -bound, bound)
        b = jax.random.uniform(kb, (1, fout), jnp.float32, -bound, bound)
        params[name] = (w, b)
    return params


def reference_forward(x, params):
    """Pure f32 reference (matches PyTorch eval semantics)."""
    h = x
    for name in ["layer1", "layer2", "layer3"]:
        w, b = params[name]
        h = jnp.maximum(h @ w + b, 0.0)
    w, b = params["output"]
    return h @ w + b


def reference_forward_bf16(x, params):
    """Reference mirroring the kernel's bf16-input / f32-accumulate numerics."""
    h = x
    for name in ["layer1", "layer2", "layer3"]:
        w, b = params[name]
        hb = h.astype(jnp.bfloat16).astype(jnp.float32)
        wb = w.astype(jnp.bfloat16).astype(jnp.float32)
        h = jnp.maximum(hb @ wb + b, 0.0)
    w, b = params["output"]
    return h @ w.astype(jnp.float32) + b


if __name__ == "__main__":
    key = jax.random.PRNGKey(0)
    input_size = 8   # checkpoint['input_size'] stand-in (synthetic)

    kx1, kx2, kp = jax.random.split(key, 3)
    params = init_params(kp, input_size)

    # Case 1: tiny batch (single grid step, exercises tail padding 8 -> 16 rows).
    x1 = jax.random.normal(kx1, (8, input_size), jnp.float32)
    out1 = jax.block_until_ready(temperature_nn_forward(x1, params))
    assert out1.shape == (8, 1)
    assert jnp.allclose(out1, reference_forward_bf16(x1, params), atol=1e-3, rtol=1e-3), \
        "mismatch vs bf16-mirrored reference (small batch)"
    assert jnp.allclose(out1, reference_forward(x1, params), atol=7e-2, rtol=7e-2), \
        "mismatch vs f32 reference (small batch)"

    # Case 2: batch not divisible by BLOCK_M, multiple pipelined grid steps (3 x 1024).
    x2 = jax.random.normal(kx2, (2500, input_size), jnp.float32)
    out2 = jax.block_until_ready(temperature_nn_forward(x2, params))
    assert out2.shape == (2500, 1)
    assert jnp.allclose(out2, reference_forward_bf16(x2, params), atol=1e-3, rtol=1e-3), \
        "mismatch vs bf16-mirrored reference (tiled batch)"
    assert jnp.allclose(out2, reference_forward(x2, params), atol=7e-2, rtol=7e-2), \
        "mismatch vs f32 reference (tiled batch)"

    print("KERNEL_OK")
</pallas_src>

<mosaic_0001>
module attributes {stable_mosaic.version = 11 : i64} {
  func.func @_mlp_kernel(%arg0: i32, %arg1: memref<16x8xbf16, #tpu.memory_space<vmem>>, %arg2: memref<8x64xbf16, #tpu.memory_space<vmem>>, %arg3: memref<1x64xf32, #tpu.memory_space<vmem>>, %arg4: memref<64x32xbf16, #tpu.memory_space<vmem>>, %arg5: memref<1x32xf32, #tpu.memory_space<vmem>>, %arg6: memref<32x16xbf16, #tpu.memory_space<vmem>>, %arg7: memref<1x16xf32, #tpu.memory_space<vmem>>, %arg8: memref<1x16xf32, #tpu.memory_space<vmem>>, %arg9: memref<1x1xf32, #tpu.memory_space<vmem>>, %arg10: memref<16x1xf32, #tpu.memory_space<vmem>>) attributes {dimension_semantics = [#tpu.dimension_semantics<parallel>], iteration_bounds = array<i64: 1>, scalar_prefetch = 0 : i64, scratch_operands = 0 : i64, tpu.core_type = #tpu.core_type<tc>, window_params = [{transform_indices = @transform_0, window_bounds = array<i64: 16, 8>}, {pipeline_mode = #tpu.pipeline_mode<synchronous>, transform_indices = @transform_1, window_bounds = array<i64: 8, 64>}, {pipeline_mode = #tpu.pipeline_mode<synchronous>, transform_indices = @transform_2, window_bounds = array<i64: 1, 64>}, {pipeline_mode = #tpu.pipeline_mode<synchronous>, transform_indices = @transform_3, window_bounds = array<i64: 64, 32>}, {pipeline_mode = #tpu.pipeline_mode<synchronous>, transform_indices = @transform_4, window_bounds = array<i64: 1, 32>}, {pipeline_mode = #tpu.pipeline_mode<synchronous>, transform_indices = @transform_5, window_bounds = array<i64: 32, 16>}, {pipeline_mode = #tpu.pipeline_mode<synchronous>, transform_indices = @transform_6, window_bounds = array<i64: 1, 16>}, {pipeline_mode = #tpu.pipeline_mode<synchronous>, transform_indices = @transform_7, window_bounds = array<i64: 1, 16>}, {pipeline_mode = #tpu.pipeline_mode<synchronous>, transform_indices = @transform_8, window_bounds = array<i64: 1, 1>}, {transform_indices = @transform_9, window_bounds = array<i64: 16, 1>}]} {
    %c0 = arith.constant 0 : index
    %c0_0 = arith.constant 0 : index
    %0 = vector.load %arg1[%c0, %c0_0] : memref<16x8xbf16, #tpu.memory_space<vmem>>, vector<16x8xbf16>
    %c0_1 = arith.constant 0 : index
    %c0_2 = arith.constant 0 : index
    %1 = vector.load %arg2[%c0_1, %c0_2] : memref<8x64xbf16, #tpu.memory_space<vmem>>, vector<8x64xbf16>
    %cst = arith.constant dense<0.000000e+00> : vector<16x64xf32>
    %2 = tpu.matmul %0, %1, %cst {dimension_numbers = #tpu.dot_dimension_numbers<[1], [0], [0], [1], [0, 0, 1, 1], [], []>} : vector<16x8xbf16>, vector<8x64xbf16>, vector<16x64xf32> -> vector<16x64xf32>
    %c0_3 = arith.constant 0 : index
    %c0_4 = arith.constant 0 : index
    %3 = vector.load %arg3[%c0_3, %c0_4] : memref<1x64xf32, #tpu.memory_space<vmem>>, vector<1x64xf32>
    %4 = vector.broadcast %3 : vector<1x64xf32> to vector<16x64xf32>
    %5 = arith.addf %2, %4 : vector<16x64xf32>
    %cst_5 = arith.constant 0.000000e+00 : f32
    %6 = vector.broadcast %cst_5 : f32 to vector<16x64xf32>
    %7 = arith.maximumf %5, %6 : vector<16x64xf32>
    %8 = arith.truncf %7 : vector<16x64xf32> to vector<16x64xbf16>
    %c0_6 = arith.constant 0 : index
    %c0_7 = arith.constant 0 : index
    %9 = vector.load %arg4[%c0_6, %c0_7] : memref<64x32xbf16, #tpu.memory_space<vmem>>, vector<64x32xbf16>
    %cst_8 = arith.constant dense<0.000000e+00> : vector<16x32xf32>
    %10 = tpu.matmul %8, %9, %cst_8 {dimension_numbers = #tpu.dot_dimension_numbers<[1], [0], [0], [1], [0, 0, 1, 1], [], []>} : vector<16x64xbf16>, vector<64x32xbf16>, vector<16x32xf32> -> vector<16x32xf32>
    %c0_9 = arith.constant 0 : index
    %c0_10 = arith.constant 0 : index
    %11 = vector.load %arg5[%c0_9, %c0_10] : memref<1x32xf32, #tpu.memory_space<vmem>>, vector<1x32xf32>
    %12 = vector.broadcast %11 : vector<1x32xf32> to vector<16x32xf32>
    %13 = arith.addf %10, %12 : vector<16x32xf32>
    %cst_11 = arith.constant 0.000000e+00 : f32
    %14 = vector.broadcast %cst_11 : f32 to vector<16x32xf32>
    %15 = arith.maximumf %13, %14 : vector<16x32xf32>
    %16 = arith.truncf %15 : vector<16x32xf32> to vector<16x32xbf16>
    %c0_12 = arith.constant 0 : index
    %c0_13 = arith.constant 0 : index
    %17 = vector.load %arg6[%c0_12, %c0_13] : memref<32x16xbf16, #tpu.memory_space<vmem>>, vector<32x16xbf16>
    %cst_14 = arith.constant dense<0.000000e+00> : vector<16x16xf32>
    %18 = tpu.matmul %16, %17, %cst_14 {dimension_numbers = #tpu.dot_dimension_numbers<[1], [0], [0], [1], [0, 0, 1, 1], [], []>} : vector<16x32xbf16>, vector<32x16xbf16>, vector<16x16xf32> -> vector<16x16xf32>
    %c0_15 = arith.constant 0 : index
    %c0_16 = arith.constant 0 : index
    %19 = vector.load %arg7[%c0_15, %c0_16] : memref<1x16xf32, #tpu.memory_space<vmem>>, vector<1x16xf32>
    %20 = vector.broadcast %19 : vector<1x16xf32> to vector<16x16xf32>
    %21 = arith.addf %18, %20 : vector<16x16xf32>
    %cst_17 = arith.constant 0.000000e+00 : f32
    %22 = vector.broadcast %cst_17 : f32 to vector<16x16xf32>
    %23 = arith.maximumf %21, %22 : vector<16x16xf32>
    %c0_18 = arith.constant 0 : index
    %c0_19 = arith.constant 0 : index
    %24 = vector.load %arg8[%c0_18, %c0_19] : memref<1x16xf32, #tpu.memory_space<vmem>>, vector<1x16xf32>
    %25 = vector.broadcast %24 : vector<1x16xf32> to vector<16x16xf32>
    %26 = arith.mulf %23, %25 : vector<16x16xf32>
    %cst_20 = arith.constant dense<0.000000e+00> : vector<16xf32>
    %27 = vector.multi_reduction <add>, %26, %cst_20 [1] : vector<16x16xf32> to vector<16xf32>
    %28 = vector.shape_cast %27 : vector<16xf32> to vector<16x1xf32>
    %c0_21 = arith.constant 0 : index
    %c0_22 = arith.constant 0 : index
    %29 = vector.load %arg9[%c0_21, %c0_22] : memref<1x1xf32, #tpu.memory_space<vmem>>, vector<1x1xf32>
    %30 = vector.broadcast %29 : vector<1x1xf32> to vector<16x1xf32>
    %31 = arith.addf %28, %30 : vector<16x1xf32>
    %c0_23 = arith.constant 0 : index
    %c0_24 = arith.constant 0 : index
    %32 = vector.load %arg10[%c0_23, %c0_24] : memref<16x1xf32, #tpu.memory_space<vmem>>, vector<16x1xf32>
    tpu.vector_store %arg10[%c0_23, %c0_24], %31 {strides = array<i32>} : memref<16x1xf32, #tpu.memory_space<vmem>>, vector<16x1xf32>,
    return
  }
  func.func @transform_0(%arg0: i32) -> (i32, i32) {
    %c0_i32 = arith.constant 0 : i32
    %c0_i32_0 = arith.constant 0 : i32
    return %arg0, %c0_i32 : i32, i32
  }
  func.func @transform_1(%arg0: i32) -> (i32, i32) {
    %c0_i32 = arith.constant 0 : i32
    %c0_i32_0 = arith.constant 0 : i32
    %c0_i32_1 = arith.constant 0 : i32
    return %c0_i32, %c0_i32_0 : i32, i32
  }
  func.func @transform_2(%arg0: i32) -> (i32, i32) {
    %c0_i32 = arith.constant 0 : i32
    %c0_i32_0 = arith.constant 0 : i32
    %c0_i32_1 = arith.constant 0 : i32
    return %c0_i32, %c0_i32_0 : i32, i32
  }
  func.func @transform_3(%arg0: i32) -> (i32, i32) {
    %c0_i32 = arith.constant 0 : i32
    %c0_i32_0 = arith.constant 0 : i32
    %c0_i32_1 = arith.constant 0 : i32
    return %c0_i32, %c0_i32_0 : i32, i32
  }
  func.func @transform_4(%arg0: i32) -> (i32, i32) {
    %c0_i32 = arith.constant 0 : i32
    %c0_i32_0 = arith.constant 0 : i32
    %c0_i32_1 = arith.constant 0 : i32
    return %c0_i32, %c0_i32_0 : i32, i32
  }
  func.func @transform_5(%arg0: i32) -> (i32, i32) {
    %c0_i32 = arith.constant 0 : i32
    %c0_i32_0 = arith.constant 0 : i32
    %c0_i32_1 = arith.constant 0 : i32
    return %c0_i32, %c0_i32_0 : i32, i32
  }
  func.func @transform_6(%arg0: i32) -> (i32, i32) {
    %c0_i32 = arith.constant 0 : i32
    %c0_i32_0 = arith.constant 0 : i32
    %c0_i32_1 = arith.constant 0 : i32
    return %c0_i32, %c0_i32_0 : i32, i32
  }
  func.func @transform_7(%arg0: i32) -> (i32, i32) {
    %c0_i32 = arith.constant 0 : i32
    %c0_i32_0 = arith.constant 0 : i32
    %c0_i32_1 = arith.constant 0 : i32
    return %c0_i32, %c0_i32_0 : i32, i32
  }
  func.func @transform_8(%arg0: i32) -> (i32, i32) {
    %c0_i32 = arith.constant 0 : i32
    %c0_i32_0 = arith.constant 0 : i32
    %c0_i32_1 = arith.constant 0 : i32
    return %c0_i32, %c0_i32_0 : i32, i32
  }
  func.func @transform_9(%arg0: i32) -> (i32, i32) {
    %c0_i32 = arith.constant 0 : i32
    %c0_i32_0 = arith.constant 0 : i32
    return %arg0, %c0_i32 : i32, i32
  }
}

</mosaic_0001>

<bundles_post_ra>
// kernel: tpu_custom_call.1
= control target key start
LH: loop header
LB: loop body
LE: loop exit
PB: predicated region body
PF: predicated region fallthrough
CT: control target
= control target key end

     0   :  { %vm54_vm0 = vcmask 1043456   ;;  %v351_v0 = vmov 0.0   ;;  %vm352_vm1 = vmmov 0   ;;  %vm50_vm2 = vcmask 64512   ;;  %s448_s1 = inlined_call_operand.vmem [shape: bf16[8,64], index: 1, kind: input, shape index: {}]   ;;  %s449_s0 = inlined_call_operand.vmem [shape: bf16[16,8], index: 0, kind: input, shape index: {}]   ;;  %s450_s3 = inlined_call_operand.vmem [shape: bf16[64,32], index: 3, kind: input, shape index: {}]   ;;  %s451_s2 = inlined_call_operand.vmem [shape: f32[1,64], index: 2, kind: input, shape index: {}]   ;;  %s452_s5 = inlined_call_operand.vmem [shape: bf16[32,16], index: 5, kind: input, shape index: {}]   ;;  %s453_s4 = inlined_call_operand.vmem [shape: f32[1,32], index: 4, kind: input, shape index: {}]   ;;  %s454_s8 = inlined_call_operand.<no memory space> [shape: f32[1,1], index: 8, kind: input, shape index: {}]   ;;  %s455_s6 = inlined_call_operand.vmem [shape: f32[1,16], index: 6, kind: input, shape index: {}]   ;;  %s456_s7 = inlined_call_operand.vmem [shape: f32[1,16], index: 7, kind: input, shape index: {}]   ;;  %s457_s9 = inlined_call_operand.vmem [shape: f32[16,1], index: 9, kind: output, shape index: {}]  }
   0x1   :  { %316 = vmatprep.subr.bf16.mxu0 %v351_v0  ;;  %v37_v1 = vld [vmem:[%s448_s1] sm:$0xf]  ;;  %318 = vmatprep.mubr.msk.bf16.mxu0 %vm352_vm1, %v351_v0  ;;  %v345_v4 = vld [vmem:[%s450_s3 + $0x18] sm:$0xff]   ;;  %v346_v5 = vld [vmem:[%s450_s3 + $0x10] sm:$0xff]   ;;  %vm141_vm3 = vcmask 523264   ;;  %vm212_vm4 = vcmask 261120   ;;  %v14_v30 = vstv %s454_s8 }
   0x2   :  { %v56_v2 = vsel %vm54_vm0, %v37_v1, 0  ;;  %v344_v3 = vld [vmem:[%s449_s0] sm:$0xff]   ;;  %322 = vmatprep.subr.bf16.mxu1 %v351_v0  ;;  %330 = vmatprep.mubr.msk.bf16.mxu1 %vm352_vm1, %v351_v0  ;;  %v347_v6 = vld [vmem:[%s450_s3 + $0x8] sm:$0xff]   ;;  %15 = vst [vmem:[#allocation2] sm:$0x1] %v14_v30  ;;  %vm268_vm5 = vcmask 130048  }
   0x3   :  { %317 = vmatpush3.bf16.msra.mxu0 %v56_v2  ;;  %323 = vmatpush3.bf16.msra.mxu1 %v345_v4  ;;  %v348_v7 = vld [vmem:[%s450_s3] sm:$0xff]   ;;  %v349_v18 = vld [vmem:[%s452_s5 + $0x8] sm:$0xff]   ;;  %vm284_vm6 = vcmask 7168  }
   0x4   :  { %334 = vmatprep.subr.bf16.mxu0 %v351_v0  ;;  %324 = vmatprep.subr.bf16.mxu1 %v351_v0  ;;  %v291_v8 = vld [vmem:[%s451_s2] ss:$0 sm:$0xff] }
   0x5   :  { %v350_v19 = vld [vmem:[%s452_s5] sm:$0xff]  }
   0x6   :  { %319 = vmatmul.mubr.msk.bf16.vlgmr.msra.gmra.mxu0 %vm50_vm2, %v344_v3  ;;  %v294_v20 = vld [vmem:[%s453_s4] ss:$0 sm:$0xff] }
   0x7   :  { %338 = vmatprep.mubr.msk.bf16.mxu0 %vm352_vm1, %v351_v0  ;;  %325 = vmatpush3.bf16.msra.mxu1 %v346_v5  ;;  %v300_v31 = vld [vmem:[%s455_s6] ss:$0 sm:$0xff] }
   0x8   :  { %326 = vmatprep.subr.bf16.mxu1 %v351_v0  ;;  %335 = vmatpush3.bf16.msra.mxu0 %v349_v18  ;;  %v304_v35 = vld [vmem:[%s456_s7] ss:$0 sm:$0xff] }
   0x9   :  { %336 = vmatprep.subr.bf16.mxu0 %v351_v0  ;;  %v305_v45 = vld [vmem:[#allocation2] ss:$0 sm:$0xff] }
   0xb   :  { %327 = vmatpush3.bf16.msra.mxu1 %v347_v6 }
   0xc   :  { %328 = vmatprep.subr.bf16.mxu1 %v351_v0  ;;  %337 = vmatpush3.bf16.msra.mxu0 %v350_v19 }
   0xf   :  { %329 = vmatpush3.bf16.msra.mxu1 %v348_v7 }
  0xc6   :  { %v92_v9 = vpop.f32.mrf.mxu0 }
  0xc7   :  { %v93_v11 = vadd.f32 %v291_v8, %v92_v9 }
  0xc8   :  { %v320_v10 = vpop.f32.mrf.mxu0 }
  0xc9   :  { %v99_v15 = vmax.f32 %v93_v11, 0.0 }
  0xca   :  { %v95_v12 = vpop.f32.mrf.mxu0 }
  0xcb   :  { %v96_v13 = vadd.f32 %v291_v8, %v95_v12 }
  0xcc   :  { %v321_v14 = vpop.f32.mrf.mxu0 }
  0xcd   :  { %v100_v16 = vmax.f32 %v96_v13, 0.0 }
  0xcf   :  { %v101_v17 = vpack.c.bf16 %v100_v16, %v99_v15 }
  0xd1   :  { %331 = vmatmul.mubr.msk.bf16.vlgmr.msra.gmra.mxu1 %vm141_vm3, %v101_v17 }
 0x191   :  { %v179_v21 = vpop.f32.mrf.mxu1 }
 0x192   :  { %v180_v23 = vadd.f32 %v294_v20, %v179_v21 }
 0x193   :  { %v332_v22 = vpop.f32.mrf.mxu1 }
 0x194   :  { %v186_v27 = vmax.f32 %v180_v23, 0.0 }
 0x195   :  { %v182_v24 = vpop.f32.mrf.mxu1 }
 0x196   :  { %v183_v25 = vadd.f32 %v294_v20, %v182_v24 }
 0x197   :  { %v333_v26 = vpop.f32.mrf.mxu1 }
 0x198   :  { %v187_v28 = vmax.f32 %v183_v25, 0.0 }
 0x19a   :  { %v188_v29 = vpack.c.bf16 %v187_v28, %v186_v27 }
 0x19c   :  { %339 = vmatmul.mubr.msk.bf16.vlgmr.msra.gmra.mxu0 %vm212_vm4, %v188_v29 }
 0x25c   :  { %v250_v32 = vpop.f32.mrf.mxu0 }
 0x25d   :  { %v251_v33 = vadd.f32 %v300_v31, %v250_v32 }
 0x25e   :  { %v340_v34 = vpop.f32.mrf.mxu0 }
 0x25f   :  { %v257_v36 = vmax.f32 %v251_v33, 0.0 }
 0x260   :  { %v253_v37 = vpop.f32.mrf.mxu0 }
 0x261   :  { %v254_v38 = vadd.f32 %v300_v31, %v253_v37  ;;  %v266_v39 = vmul.f32 %v304_v35, %v257_v36 }
 0x262   :  { %v341_v40 = vpop.f32.mrf.mxu0 }
 0x263   :  { %v258_v41 = vmax.f32 %v254_v38, 0.0  ;;  %v269_v42 = vsel %vm268_vm5, %v266_v39, 0.0 }
 0x264   :  { %270 = vadd.xlane.f32.xlu0 %v269_v42 }
 0x265   :  { %v267_v43 = vmul.f32 %v304_v35, %v258_v41 }
 0x267   :  { %v272_v44 = vsel %vm268_vm5, %v267_v43, 0.0 }
 0x268   :  { %273 = vadd.xlane.f32.xlu0 %v272_v44 }
 0x2ed   :  { %v271_v46 = vpop.xlane.xlu0 %270 }
 0x2ee   :  { %v282_v47 = vadd.f32 %v305_v45, %v271_v46 }
 0x2f0   :  { %285 = vst.msk [vmem:[%s457_s9] sm:$0xff] %vm284_vm6, %v282_v47 }
 0x2f1   :  { %v274_v48 = vpop.xlane.xlu0 %273 }
 0x2f2   :  { %v283_v49 = vadd.f32 %v305_v45, %v274_v48 }
 0x2f4   :  { %286 = vst.msk [vmem:[%s457_s9 + $0x8] sm:$0xff] %vm284_vm6, %v283_v49 }

</bundles_post_ra>
